<compile_context>
chip_gen: v6e
topology: v6e:2x2x1
jax: 0.10.0
libtpu: 0.0.40
codegen_flags: <defaults>
</compile_context>

<pallas_src>
import functools

import jax
import jax.numpy as jnp
from jax.experimental import pallas as pl
from jax.experimental.pallas import tpu as pltpu

_BN_EPS = 1e-5
_MXU_DTYPE = jnp.bfloat16
_ACT_DTYPE = jnp.bfloat16
_LAYER_STRIDE_PAD = [(1, 0), (2, 1), (2, 1), (2, 1), (2, 1)]


# ------------------------------ small helpers -------------------------------

def _round_up(x, m):
    return ((x + m - 1) // m) * m


def _row_block(r, cap):
    """Largest divisor of r that is <= cap and a multiple of 8 (or r)."""
    if r <= cap:
        return r
    for d in range(cap, 0, -1):
        if r % d == 0 and d % 8 == 0:
            return d
    # TODO(synk): pad + masked last block instead of a whole-extent fallback.
    return r


def _col_block(f, cap):
    if f <= cap:
        return f
    d = cap - cap % 128
    while d >= 128:
        if f % d == 0:
            return d
        d -= 128
    return f


def _batch_block(n, rows_per_sample, target=512):
    """Samples per conv block; keep >=2 grid steps when n >= 2 (v7x 2 TCs)."""
    nb = max(1, min(n, target // max(rows_per_sample, 1)))
    while n % nb:
        nb -= 1
    if n >= 2 and n // nb < 2:
        nb = max(1, n // 2)
        while n % nb:
            nb -= 1
    return nb


@functools.lru_cache(maxsize=None)
def _vmem_limit_bytes():
    # ~96 MiB on v5e/v6e (128 MiB physical), ~48 MiB on v7x (64 MiB physical).
    try:
        cap = pltpu.get_tpu_info().vmem_capacity_bytes
    except Exception:
        cap = 64 * 1024 * 1024
    return int(max(min(cap * 3 // 4, 100 * 1024 * 1024), 32 * 1024 * 1024))


# ----------------------------- Pallas kernels -------------------------------

def _l1_matmul_kernel(z_ref, w_ref, y_ref, s_ref):
    # z_ref: (nb, nz) bf16; w_ref: (nz, fb) bf16; y_ref: (nb, fb) bf16
    # s_ref: (1, 2, fb) f32 per-block [sum, sumsq] for two-pass BatchNorm.
    acc = jnp.dot(z_ref[...], w_ref[...], preferred_element_type=jnp.float32)
    y_ref[...] = acc.astype(y_ref.dtype)
    s_ref[0, 0:1, :] = jnp.sum(acc, axis=0, keepdims=True)
    s_ref[0, 1:2, :] = jnp.sum(acc * acc, axis=0, keepdims=True)


def _subpixel_conv_kernel(x_ref, w_ref, y_ref, *rest, nb, h, wpad, w_real,
                          apply_tanh):
    # x_ref: (nb, h+2, wpad+2, cinp) bf16  whole padded sample(s)
    # w_ref: (9*cinp, f) bf16             im2col-folded ConvT(4,2,1) weight
    # y_ref: (nb*h*wpad, f)               packed phase-channel output rows
    # s_ref: (1, 2, f) f32                per-block [sum, sumsq] (BN layers)
    # patch_ref: VMEM scratch (nb*h*wpad, 9*cinp) bf16  im2col buffer
    if apply_tanh:
        (patch_ref,) = rest
    else:
        s_ref, patch_ref = rest
    cinp = x_ref.shape[-1]
    m = nb * h * wpad

    # Fold all 9 taps into the MXU contraction dim: one matmul with K=9*cinp.
    for eh in range(3):
        for ew in range(3):
            t = eh * 3 + ew
            sl = x_ref[:, eh:eh + h, ew:ew + wpad, :]
            patch_ref[:, t * cinp:(t + 1) * cinp] = sl.reshape(m, cinp)

    acc = jnp.dot(patch_ref[...], w_ref[...],
                  preferred_element_type=jnp.float32)

    if apply_tanh:
        y_ref[...] = jnp.tanh(acc).astype(y_ref.dtype)
        return

    y_ref[...] = acc.astype(y_ref.dtype)
    if w_real < wpad:
        # Exclude the width-alignment pad columns from the BN statistics
        # (the first pad column still sees real boundary data).
        col = jax.lax.broadcasted_iota(jnp.int32, (m, 1), 0) % wpad
        valid = (col < w_real).astype(jnp.float32)
        acc_m = acc * valid
        s_ref[0, 0:1, :] = jnp.sum(acc_m, axis=0, keepdims=True)
        s_ref[0, 1:2, :] = jnp.sum(acc_m * acc, axis=0, keepdims=True)
    else:
        s_ref[0, 0:1, :] = jnp.sum(acc, axis=0, keepdims=True)
        s_ref[0, 1:2, :] = jnp.sum(acc * acc, axis=0, keepdims=True)


def _scale_shift_relu_kernel(y_ref, sc_ref, sh_ref, o_ref):
    # bf16 in / bf16 out, f32 arithmetic (v5e has no bf16 VALU).
    y = y_ref[...].astype(jnp.float32)
    o_ref[...] = jnp.maximum(y * sc_ref[...] + sh_ref[...],
                             0.0).astype(o_ref.dtype)


# --------------------------- pallas_call wrappers ----------------------------

def _l1_conv(z2, w_packed):
    n, cin = z2.shape
    f = w_packed.shape[1]
    nb = _row_block(n, 256)
    fb = _col_block(f, 2048)
    return pl.pallas_call(
        _l1_matmul_kernel,
        out_shape=(jax.ShapeDtypeStruct((n, f), _ACT_DTYPE),
                   jax.ShapeDtypeStruct((n // nb, 2, f), jnp.float32)),
        grid=(n // nb, f // fb),
        in_specs=[pl.BlockSpec((nb, cin), lambda i, j: (i, 0)),
                  pl.BlockSpec((cin, fb), lambda i, j: (0, j))],
        out_specs=(pl.BlockSpec((nb, fb), lambda i, j: (i, j)),
                   pl.BlockSpec((1, 2, fb), lambda i, j: (i, 0, j))),
        compiler_params=pltpu.CompilerParams(
            dimension_semantics=("parallel", "parallel"),
            vmem_limit_bytes=_vmem_limit_bytes()),
    )(z2, w_packed)


def _subpixel_conv(xp, w_packed, w_real, apply_tanh):
    n, hp, wp_tot, cinp = xp.shape
    h, wpad = hp - 2, wp_tot - 2
    f = w_packed.shape[-1]
    nb = _batch_block(n, h * wpad)
    m = nb * h * wpad
    kern = functools.partial(_subpixel_conv_kernel, nb=nb, h=h, wpad=wpad,
                             w_real=w_real, apply_tanh=apply_tanh)
    in_specs = [
        pl.BlockSpec((nb, hp, wp_tot, cinp), lambda i: (i, 0, 0, 0)),
        # TODO(synk): single-buffer this constant-index weight block
        # (pipeline_mode=pl.Buffered(1)) to save VMEM on v7x.
        pl.BlockSpec((9 * cinp, f), lambda i: (0, 0)),
    ]
    scratch = [pltpu.VMEM((m, 9 * cinp), _MXU_DTYPE)]
    cp = pltpu.CompilerParams(dimension_semantics=("parallel",),
                              vmem_limit_bytes=_vmem_limit_bytes())
    y_shape = jax.ShapeDtypeStruct((n * h * wpad, f), _ACT_DTYPE)
    y_spec = pl.BlockSpec((m, f), lambda i: (i, 0))
    if apply_tanh:
        return pl.pallas_call(
            kern, out_shape=y_shape, grid=(n // nb,), in_specs=in_specs,
            out_specs=y_spec, scratch_shapes=scratch, compiler_params=cp,
        )(xp, w_packed)
    s_shape = jax.ShapeDtypeStruct((n // nb, 2, f), jnp.float32)
    s_spec = pl.BlockSpec((1, 2, f), lambda i: (i, 0, 0))
    return pl.pallas_call(
        kern, out_shape=(y_shape, s_shape), grid=(n // nb,),
        in_specs=in_specs, out_specs=(y_spec, s_spec),
        scratch_shapes=scratch, compiler_params=cp,
    )(xp, w_packed)


def _scale_shift_relu(y2d, scale, shift):
    r, f = y2d.shape
    rb = _row_block(r, 1024)
    return pl.pallas_call(
        _scale_shift_relu_kernel,
        out_shape=jax.ShapeDtypeStruct((r, f), _ACT_DTYPE),
        grid=(r // rb,),
        in_specs=[pl.BlockSpec((rb, f), lambda i: (i, 0)),
                  pl.BlockSpec((1, f), lambda i: (0, 0)),
                  pl.BlockSpec((1, f), lambda i: (0, 0))],
        out_specs=pl.BlockSpec((rb, f), lambda i: (i, 0)),
        compiler_params=pltpu.CompilerParams(
            dimension_semantics=("parallel",),
            vmem_limit_bytes=_vmem_limit_bytes()),
    )(y2d, scale, shift)


# -------------------------------- JAX glue -----------------------------------

def _bn_scale_shift(stats, gamma_p, beta_p, count, phases, coutp):
    # stats: (blocks, 2, phases*coutp) per-block [sum, sumsq] in packed layout.
    s = jnp.sum(stats.reshape(-1, 2, phases, coutp), axis=(0, 2))   # (2,coutp)
    mean = s[0] / count
    var = jnp.maximum(s[1] / count - mean * mean, 0.0)   # biased (training BN)
    scale_c = gamma_p * jax.lax.rsqrt(var + _BN_EPS)
    shift_c = beta_p - mean * scale_c
    scale = jnp.tile(scale_c, phases).reshape(1, phases * coutp)
    shift = jnp.tile(shift_c, phases).reshape(1, phases * coutp)
    return scale, shift


def _depth_to_space(y, coutp):
    n, h, w, _ = y.shape
    y = y.reshape(n, h, w, 2, 2, coutp)
    y = jnp.transpose(y, (0, 1, 3, 2, 4, 5))
    return y.reshape(n, 2 * h, 2 * w, coutp)


def _pack_l1_weight(w_pt, coutp):
    # (Cin, Cout, 4, 4) -> (Cin, 16*Coutp); column = kh*4*Coutp + kw*Coutp + co
    cin, cout, k, _ = w_pt.shape
    w = jnp.transpose(w_pt, (0, 2, 3, 1))                 # (cin, kh, kw, cout)
    w = jnp.pad(w, ((0, 0), (0, 0), (0, 0), (0, coutp - cout)))
    return w.reshape(cin, k * k * coutp).astype(_MXU_DTYPE)


def _pack_subpixel_weight(w_pt, cinp, coutp):
    # ConvTranspose2d(4,2,1) == 3x3 stride-1 conv over the input padded by 1,
    # with the 4 output phases (rh, rw) folded into the channel dim:
    #   y[q, m, rh, rw, co] = sum_{eh,ew,ci} xpad[q+eh, m+ew, ci] *
    #                         Wp[eh, ew, ci, rh, rw, co]
    #   Wp[...] = w_pt[ci, co, 3-(2*eh-rh), 3-(2*ew-rw)]  if 0<=2e-r<=3 else 0
    # Returned flattened as (9*cinp, 4*coutp) for the im2col matmul.
    cin, cout, _, _ = w_pt.shape
    wt = jnp.transpose(w_pt, (2, 3, 0, 1))                # (kh, kw, cin, cout)
    wp = jnp.zeros((3, 3, cinp, 2, 2, coutp), jnp.float32)
    for eh in range(3):
        for rh in range(2):
            kh = 2 * eh - rh
            if not 0 <= kh <= 3:
                continue
            for ew in range(3):
                for rw in range(2):
                    kw = 2 * ew - rw
                    if not 0 <= kw <= 3:
                        continue
                    wp = wp.at[eh, ew, :cin, rh, rw, :cout].set(
                        wt[3 - kh, 3 - kw])
    return wp.reshape(9 * cinp, 4 * coutp).astype(_MXU_DTYPE)


# -------------------------------- parameters ---------------------------------

def init_generator_params(key, nz, ngf, nc):
    """Raw params in PyTorch ConvTranspose2d layout (Cin, Cout, 4, 4)."""
    channel_pairs = [(nz, ngf * 8), (ngf * 8, ngf * 4), (ngf * 4, ngf * 2),
                     (ngf * 2, ngf), (ngf, nc)]
    params = []
    for i, (cin, cout) in enumerate(channel_pairs):
        key, kw, kg = jax.random.split(key, 3)
        w_pt = 0.02 * jax.random.normal(kw, (cin, cout, 4, 4), jnp.float32)
        if i < len(channel_pairs) - 1:
            gamma = 1.0 + 0.02 * jax.random.normal(kg, (cout,), jnp.float32)
            beta = jnp.zeros((cout,), jnp.float32)
        else:
            gamma, beta = None, None
        params.append({"w": w_pt, "gamma": gamma, "beta": beta,
                       "cin": cin, "cout": cout})
    return params


def pack_generator_params(raw_params):
    packed = []
    prev_coutp = None
    for i, p in enumerate(raw_params):
        cout = p["cout"]
        last = i == len(raw_params) - 1
        if i == 0:
            coutp = _round_up(cout, 8)       # 16*coutp % 128 == 0
            cinp = p["cin"]
            w = _pack_l1_weight(p["w"], coutp)
        else:
            # BN layers: 4*coutp % 128 == 0 (lane-dense); final tanh layer:
            # minimum padding (4*coutp = 32) to trim its largest HBM write.
            coutp = _round_up(cout, 8 if last else 32)
            cinp = prev_coutp
            w = _pack_subpixel_weight(p["w"], cinp, coutp)
        gamma_p = beta_p = None
        if p["gamma"] is not None:
            gamma_p = jnp.pad(p["gamma"], (0, coutp - cout))
            beta_p = jnp.pad(p["beta"], (0, coutp - cout))
        packed.append({"w": w, "cinp": cinp, "coutp": coutp, "cout": cout,
                       "gamma": gamma_p, "beta": beta_p})
        prev_coutp = coutp
    return packed


# --------------------------------- forward -----------------------------------

def generator_forward(packed_params, z_nchw):
    n = z_nchw.shape[0]

    # Layer 1: ConvTranspose2d(nz, ngf*8, 4, 1, 0) + BN + ReLU as one matmul.
    p = packed_params[0]
    coutp = p["coutp"]
    z2 = z_nchw.reshape(n, -1).astype(_MXU_DTYPE)          # spatial is 1x1
    y, stats = _l1_conv(z2, p["w"])
    scale, shift = _bn_scale_shift(stats, p["gamma"], p["beta"],
                                   count=n * 16, phases=16, coutp=coutp)
    y = _scale_shift_relu(y, scale, shift)
    x = y.reshape(n, 4, 4, coutp)                           # bf16 NHWC

    # Layers 2-5: ConvTranspose2d(k=4, s=2, p=1) via sub-pixel decomposition.
    for li, p in enumerate(packed_params[1:], start=1):
        coutp = p["coutp"]
        last = li == len(packed_params) - 1
        nn, h, w, _ = x.shape
        wpad = _round_up(w, 16)        # tile-aligned im2col / lane-dense rows
        xp = jnp.pad(x, ((0, 0), (1, 1), (1, 1 + wpad - w), (0, 0)))
        if last:
            y = _subpixel_conv(xp, p["w"], w_real=w, apply_tanh=True)
        else:
            y, stats = _subpixel_conv(xp, p["w"], w_real=w, apply_tanh=False)
            scale, shift = _bn_scale_shift(stats, p["gamma"], p["beta"],
                                           count=nn * h * w * 4, phases=4,
                                           coutp=coutp)
            y = _scale_shift_relu(y, scale, shift)
        y = y.reshape(nn, h, wpad, 4 * coutp)[:, :, :w, :]
        # TODO(synk): fold this depth-to-space + next-layer halo pad (pure
        # layout, done on bf16) into the producing kernel's output layout.
        x = _depth_to_space(y, coutp)

    x = x[..., :packed_params[-1]["cout"]]                  # drop pad channels
    return jnp.transpose(x, (0, 3, 1, 2)).astype(jnp.float32)   # NHWC -> NCHW


# -------------------------- pure-JAX reference path --------------------------

def reference_forward(raw_params, z_nchw):
    x = jnp.transpose(z_nchw, (0, 2, 3, 1))
    for p, (s, pad_amt) in zip(raw_params, _LAYER_STRIDE_PAD):
        w_pt = p["w"]
        k = w_pt.shape[2]
        w_flip = jnp.transpose(w_pt[:, :, ::-1, ::-1], (2, 3, 0, 1))   # HWIO
        pad = k - 1 - pad_amt
        y = jax.lax.conv_general_dilated(
            x, w_flip, window_strides=(1, 1),
            padding=[(pad, pad), (pad, pad)], lhs_dilation=(s, s),
            dimension_numbers=("NHWC", "HWIO", "NHWC"))
        if p["gamma"] is not None:
            mean = jnp.mean(y, axis=(0, 1, 2), keepdims=True)
            var = jnp.mean(jnp.square(y - mean), axis=(0, 1, 2), keepdims=True)
            y = (y - mean) * jax.lax.rsqrt(var + _BN_EPS)
            y = y * p["gamma"].reshape(1, 1, 1, -1) + p["beta"].reshape(1, 1, 1, -1)
            y = jnp.maximum(y, 0.0)
        else:
            y = jnp.tanh(y)
        x = y
    return jnp.transpose(x, (0, 3, 1, 2))


# ----------------------------------- main ------------------------------------

if __name__ == "__main__":
    nz, ngf, nc, batch = 16, 8, 3, 2
    key = jax.random.PRNGKey(0)
    key, kz = jax.random.split(key)
    z = jax.random.normal(kz, (batch, nz, 1, 1), jnp.float32)

    raw = init_generator_params(key, nz, ngf, nc)
    packed = pack_generator_params(raw)

    out = jax.block_until_ready(generator_forward(packed, z))

    assert out.shape == (batch, nc, 64, 64), out.shape
    assert bool(jnp.all(jnp.isfinite(out)))
    assert bool(jnp.max(jnp.abs(out)) <= 1.0 + 1e-6)   # tanh-bounded

    ref = jax.block_until_ready(reference_forward(raw, z))
    max_diff = float(jnp.max(jnp.abs(out - ref)))
    # loose tolerance: bf16 MXU operands + bf16 inter-layer activations vs an
    # f32 XLA reference (training-mode BN recomputed in both paths).
    assert max_diff < 0.1, max_diff

    print("KERNEL_OK")
</pallas_src>

<mosaic_0001>
module attributes {stable_mosaic.version = 11 : i64} {
  func.func @_l1_matmul_kernel(%arg0: i32, %arg1: i32, %arg2: memref<2x16xbf16, #tpu.memory_space<vmem>>, %arg3: memref<16x1024xbf16, #tpu.memory_space<vmem>>, %arg4: memref<2x1024xbf16, #tpu.memory_space<vmem>>, %arg5: memref<1x2x1024xf32, #tpu.memory_space<vmem>>) attributes {dimension_semantics = [#tpu.dimension_semantics<parallel>, #tpu.dimension_semantics<parallel>], iteration_bounds = array<i64: 1, 1>, scalar_prefetch = 0 : i64, scratch_operands = 0 : i64, tpu.core_type = #tpu.core_type<tc>, window_params = [{transform_indices = @transform_0, window_bounds = array<i64: 2, 16>}, {transform_indices = @transform_1, window_bounds = array<i64: 16, 1024>}, {transform_indices = @transform_2, window_bounds = array<i64: 2, 1024>}, {transform_indices = @transform_3, window_bounds = array<i64: 1, 2, 1024>}]} {
    %c0 = arith.constant 0 : index
    %c0_0 = arith.constant 0 : index
    %0 = vector.load %arg2[%c0, %c0_0] : memref<2x16xbf16, #tpu.memory_space<vmem>>, vector<2x16xbf16>
    %c0_1 = arith.constant 0 : index
    %c0_2 = arith.constant 0 : index
    %1 = vector.load %arg3[%c0_1, %c0_2] : memref<16x1024xbf16, #tpu.memory_space<vmem>>, vector<16x1024xbf16>
    %cst = arith.constant dense<0.000000e+00> : vector<2x1024xf32>
    %2 = tpu.matmul %0, %1, %cst {dimension_numbers = #tpu.dot_dimension_numbers<[1], [0], [0], [1], [0, 0, 1, 1], [], []>} : vector<2x16xbf16>, vector<16x1024xbf16>, vector<2x1024xf32> -> vector<2x1024xf32>
    %3 = arith.truncf %2 : vector<2x1024xf32> to vector<2x1024xbf16>
    %c0_3 = arith.constant 0 : index
    %c0_4 = arith.constant 0 : index
    %4 = vector.load %arg4[%c0_3, %c0_4] : memref<2x1024xbf16, #tpu.memory_space<vmem>>, vector<2x1024xbf16>
    tpu.vector_store %arg4[%c0_3, %c0_4], %3 {strides = array<i32>} : memref<2x1024xbf16, #tpu.memory_space<vmem>>, vector<2x1024xbf16>,
    %cst_5 = arith.constant dense<0.000000e+00> : vector<1024xf32>
    %5 = vector.multi_reduction <add>, %2, %cst_5 [0] : vector<2x1024xf32> to vector<1024xf32>
    %6 = vector.shape_cast %5 : vector<1024xf32> to vector<1x1024xf32>
    %c0_6 = arith.constant 0 : index
    %c0_7 = arith.constant 0 : index
    %c0_8 = arith.constant 0 : index
    %7 = vector.load %arg5[%c0_6, %c0_7, %c0_8] : memref<1x2x1024xf32, #tpu.memory_space<vmem>>, vector<1x1x1024xf32>
    %8 = vector.shape_cast %7 : vector<1x1x1024xf32> to vector<1x1024xf32>
    %9 = vector.shape_cast %6 : vector<1x1024xf32> to vector<1x1x1024xf32>
    tpu.vector_store %arg5[%c0_6, %c0_7, %c0_8], %9 {strides = array<i32>} : memref<1x2x1024xf32, #tpu.memory_space<vmem>>, vector<1x1x1024xf32>,
    %10 = arith.mulf %2, %2 : vector<2x1024xf32>
    %cst_9 = arith.constant dense<0.000000e+00> : vector<1024xf32>
    %11 = vector.multi_reduction <add>, %10, %cst_9 [0] : vector<2x1024xf32> to vector<1024xf32>
    %12 = vector.shape_cast %11 : vector<1024xf32> to vector<1x1024xf32>
    %c0_10 = arith.constant 0 : index
    %c1 = arith.constant 1 : index
    %c0_11 = arith.constant 0 : index
    %13 = vector.load %arg5[%c0_10, %c1, %c0_11] : memref<1x2x1024xf32, #tpu.memory_space<vmem>>, vector<1x1x1024xf32>
    %14 = vector.shape_cast %13 : vector<1x1x1024xf32> to vector<1x1024xf32>
    %15 = vector.shape_cast %12 : vector<1x1024xf32> to vector<1x1x1024xf32>
    tpu.vector_store %arg5[%c0_10, %c1, %c0_11], %15 {strides = array<i32>} : memref<1x2x1024xf32, #tpu.memory_space<vmem>>, vector<1x1x1024xf32>,
    return
  }
  func.func @transform_0(%arg0: i32, %arg1: i32) -> (i32, i32) {
    %c0_i32 = arith.constant 0 : i32
    %c0_i32_0 = arith.constant 0 : i32
    return %arg0, %c0_i32 : i32, i32
  }
  func.func @transform_1(%arg0: i32, %arg1: i32) -> (i32, i32) {
    %c0_i32 = arith.constant 0 : i32
    %c0_i32_0 = arith.constant 0 : i32
    return %c0_i32, %arg1 : i32, i32
  }
  func.func @transform_2(%arg0: i32, %arg1: i32) -> (i32, i32) {
    %c0_i32 = arith.constant 0 : i32
    return %arg0, %arg1 : i32, i32
  }
  func.func @transform_3(%arg0: i32, %arg1: i32) -> (i32, i32, i32) {
    %c0_i32 = arith.constant 0 : i32
    %c0_i32_0 = arith.constant 0 : i32
    return %arg0, %c0_i32, %arg1 : i32, i32, i32
  }
}

</mosaic_0001>

<bundles_post_ra>
// kernel: tpu_custom_call.1
= control target key start
LH: loop header
LB: loop body
LE: loop exit
PB: predicated region body
PF: predicated region fallthrough
CT: control target
= control target key end

     0   :  { %9 = vsyncpa [#allocation3], 0  ;;  %s826_s0 = inlined_call_operand.hbm [shape: bf16[2,16], index: 0, kind: input, shape index: {}]   ;;  %s827_s1 = inlined_call_operand.hbm [shape: bf16[16,1024], index: 1, kind: input, shape index: {}]   ;;  %s828_s2 = inlined_call_operand.hbm [shape: bf16[2,1024], index: 2, kind: output, shape index: {0}]   ;;  %s829_s3 = inlined_call_operand.hbm [shape: f32[1,2,1024], index: 3, kind: output, shape index: {1}]  }
   0x1   :  { %10 = vsyncpa [#allocation6], 0 }
   0x2   :  { %11 = vsyncpa [#allocation4], 0 }
   0x3   :  { %12 = vsyncpa [#allocation9], 0  ;;  %s708_s12 = smov [#allocation2]   ;;  %s709_s14 = smov [#allocation5]  }
   0x4   :  { %s19_s13 = sshll.u32 %s708_s12, 4  ;;  %s28_s15 = sshll.u32 %s709_s14, 4  ;;  %s20_s13 = int_to_ptr.vmem [resolvable:$true] %s19_s13  ;;  %s29_s15 = int_to_ptr.vmem [resolvable:$true] %s28_s15 }
   0x5   :  { %s628_s16 = scalar_lea.vmem %s20_s13, 16  ;;  %s632_s17 = scalar_lea.vmem %s20_s13, 32 }
   0x6   :  { %p629_p0 = scmp.ne.s32.totalorder %s20_s13, %s628_s16  ;;  %p633_p1 = scmp.lt.s32.totalorder %s20_s13, %s20_s13 }
   0x7   :  { %p634_p2 = scmp.lt.s32.totalorder %s632_s17, %s628_s16 }
   0x9   :  { %p635_p3 = por %p634_p2, %p633_p1 }
   0xb   :  { %p636_p4 = pnand %p635_p3, %p629_p0 }
   0xd   :  { %639 = shalt.err (!%p636_p4)
}
   0xe   :  { %22 = dma.hbm_to_vmem [thread:$0]  %s826_s0, 16, %s20_s13, [#allocation3]  }
   0xf   :  { %s648_s20 = scalar_lea.vmem %s29_s15, 1024  ;;  %p653_p6 = scmp.lt.s32.totalorder %s29_s15, %s29_s15 }
  0x10   :  { %p649_p5 = scmp.ne.s32.totalorder %s29_s15, %s648_s20  ;;  %p654_p7 = scmp.lt.s32.totalorder %s648_s20, %s648_s20 }
  0x12   :  { %p655_p8 = por %p654_p7, %p653_p6 }
  0x14   :  { %p656_p9 = pnand %p655_p8, %p649_p5 }
  0x16   :  { %659 = shalt.err (!%p656_p9)
}
  0x17   :  { %s710_s21 = smov 512   ;;  %s711_s22 = smov 32  }
  0x18   :  { %34 = dma.hbm_to_vmem [thread:$0]  %s827_s1, 1024, %s29_s15, [#allocation6], %s710_s21, %s710_s21, %s711_s22  }
  0x19   :  { %700 = dma.done.wait [#allocation3], 16  }
  0x1a   :  { %701 = vsyncadd [#allocation3], 4294967280 }
  0x1b   :  { %702 = dma.done.wait [#allocation6], 1024  }
  0x1c   :  { %703 = vsyncadd [#allocation6], 4294966272  ;;  %v712_v0 = vmov 0   ;;  %v43_v1 = vld [vmem:[#allocation5] sm:$0xff]  ;;  %v44_v3 = vld [vmem:[#allocation5 + $0x8] sm:$0xff]  ;;  %vm91_vm0 = vcmask 130048   ;;  %v282_v28 = vlaneseq }
  0x1d   :  { %127 = vmatprep.mubr.bf16.mxu0 %v712_v0  ;;  %168 = vmatprep.mubr.bf16.mxu1 %v712_v0  ;;  %v47_v2 = vld [vmem:[#allocation5 + $0x20] sm:$0xff]  ;;  %v48_v5 = vld [vmem:[#allocation5 + $0x28] sm:$0xff]  ;;  %v45_v7 = vld [vmem:[#allocation5 + $0x10] sm:$0xff]  ;;  %vm326_vm1 = vcmask 1041408   ;;  %v713_v22 = vmov 1966171168  }
  0x1e   :  { %v597_v4 = vcombine.high %v43_v1, %v47_v2  ;;  %v596_v6 = vcombine.low %v43_v1, %v47_v2  ;;  %v599_v8 = vcombine.high %v44_v3, %v48_v5  ;;  %v598_v9 = vcombine.low %v44_v3, %v48_v5  ;;  %v49_v10 = vld [vmem:[#allocation5 + $0x30] sm:$0xff]  ;;  %v46_v11 = vld [vmem:[#allocation5 + $0x18] sm:$0xff]  ;;  %s714_s0 = smov [#allocation7]  }
  0x1f   :  { %v50_v12 = vld [vmem:[#allocation5 + $0x38] sm:$0xff]  ;;  %v601_v13 = vcombine.high %v45_v7, %v49_v10  ;;  %v600_v16 = vcombine.low %v45_v7, %v49_v10  ;;  %v280_v23 = vunpack.c.l.s4 %v713_v22  ;;  %v283_v43 = vshrl.u32 %v282_v28, 7  ;;  %s572_s1 = sshll.u32 %s714_s0, 4  ;;  %s573_s1 = int_to_ptr.vmem [resolvable:$true] %s572_s1 }
  0x20   :  { %109 = vmatprep.subr.bf16.mxu0 %v597_v4  ;;  %v603_v14 = vcombine.high %v46_v11, %v50_v12  ;;  %150 = vmatprep.subr.bf16.mxu1 %v599_v8  ;;  %v42_v15 = vld [vmem:[#allocation2] sm:$0x1]  ;;  %v602_v17 = vcombine.low %v46_v11, %v50_v12  ;;  %s660_s25 = scalar_lea.vmem %s573_s1, 128  ;;  %p665_p11 = scmp.lt.s32.totalorder %s573_s1, %s573_s1 }
  0x21   :  { %110 = vmatpush1.bf16.msra.mxu0 %v596_v6  ;;  %151 = vmatpush1.bf16.msra.mxu1 %v598_v9  ;;  %v281_v42 = vunpack.c.0.s8 %v280_v23  ;;  %p661_p10 = scmp.ne.s32.totalorder %s573_s1, %s660_s25  ;;  %p666_p12 = scmp.lt.s32.totalorder %s660_s25, %s660_s25 }
  0x22   :  { %191 = vmatprep.subr.bf16.mxu0 %v601_v13  ;;  %232 = vmatprep.subr.bf16.mxu1 %v603_v14 }
  0x23   :  { %v753_v57 = vsub.s32 %v281_v42, %v283_v43  ;;  %p667_p13 = por %p666_p12, %p665_p11 }
  0x24   :  { %604 = vmatmul.mubr.msk.bf16.vlgmr.msra.gmra.mxu0 %vm91_vm0, %v42_v15  ;;  %605 = vmatmul.mubr.msk.bf16.vlgmr.msra.gmra.mxu1 %vm91_vm0, %v42_v15 }
  0x25   :  { %192 = vmatpush1.bf16.msra.mxu0 %v600_v16  ;;  %233 = vmatpush1.bf16.msra.mxu1 %v602_v17  ;;  %p668_p0 = pnand %p667_p13, %p661_p10 }
  0x26   :  { %209 = vmatprep.mubr.bf16.mxu0 %v712_v0  ;;  %250 = vmatprep.mubr.bf16.mxu1 %v712_v0 }
  0x2c   :  { %606 = vmatmul.mubr.msk.bf16.vlgmr.msra.gmra.mxu0 %vm91_vm0, %v42_v15  ;;  %607 = vmatmul.mubr.msk.bf16.vlgmr.msra.gmra.mxu1 %vm91_vm0, %v42_v15 }
  0xe4   :  { %v129_v18 = vpop.f32.mrf.mxu0  ;;  %v170_v21 = vpop.f32.mrf.mxu1 }
  0xe5   :  { %v327_v19 = vsel %vm326_vm1, %v129_v18, 0.0  ;;  %v442_v20 = vmul.f32 %v129_v18, %v129_v18  ;;  %v341_v25 = vsel %vm326_vm1, %v170_v21, 0.0  ;;  %v444_v26 = vmul.f32 %v170_v21, %v170_v21 }
  0xe6   :  { %v328_v24 = vrot.slane %v327_v19, 4  ;;  %v131_v27 = vpop.f32.mrf.mxu0  ;;  %v342_v30 = vrot.slane %v341_v25, 4  ;;  %v172_v32 = vpop.f32.mrf.mxu1 }
  0xe7   :  { %v450_v29 = vsel %vm326_vm1, %v442_v20, 0.0  ;;  %v334_v31 = vsel %vm326_vm1, %v131_v27, 0.0  ;;  %v464_v34 = vsel %vm326_vm1, %v444_v26, 0.0  ;;  %v443_v38 = vmul.f32 %v131_v27, %v131_v27 }
  0xe8   :  { %v451_v33 = vrot.slane %v450_v29, 4  ;;  %v133_v35 = vpop.f32.mrf.mxu0  ;;  %v329_v36 = vadd.f32 %v328_v24, %v327_v19  ;;  %v335_v37 = vrot.slane %v334_v31, 4  ;;  %v174_v39 = vpop.f32.mrf.mxu1  ;;  %v343_v40 = vadd.f32 %v342_v30, %v341_v25 }
  0xe9   :  { %v465_v41 = vrot.slane %v464_v34, 4  ;;  %v348_v46 = vsel %vm326_vm1, %v172_v32, 0.0  ;;  %v457_v48 = vsel %vm326_vm1, %v443_v38, 0.0  ;;  %v608_v56 = vpack.c.bf16 %v131_v27, %v129_v18 }
  0xea   :  { %v134_v44 = vpop.f32.mrf.mxu0  ;;  %v452_v45 = vadd.f32 %v451_v33, %v450_v29  ;;  %v175_v47 = vpop.f32.mrf.mxu1  ;;  %v330_v50 = vrot.slane %v329_v36, 2  ;;  %v336_v51 = vadd.f32 %v335_v37, %v334_v31  ;;  %v349_v52 = vrot.slane %v348_v46, 4 }
  0xeb   :  { %v344_v54 = vrot.slane %v343_v40, 2  ;;  %v466_v55 = vadd.f32 %v465_v41, %v464_v34  ;;  %v458_v60 = vrot.slane %v457_v48, 4  ;;  %v609_v61 = vpack.c.bf16 %v172_v32, %v170_v21 }
  0xec   :  { %v749_v49 = vpop.f32.mrf.mxu0  ;;  %v751_v53 = vpop.f32.mrf.mxu1  ;;  %v453_v59 = vrot.slane %v452_v45, 2  ;;  %v350_v63 = vadd.f32 %v349_v52, %v348_v46  ;;  %v331_v1 = vadd.f32 %v330_v50, %v329_v36  ;;  %v337_v2 = vrot.slane %v336_v51, 2 }
  0xed   :  { %v445_v3 = vmul.f32 %v172_v32, %v172_v32  ;;  %v345_v5 = vadd.f32 %v344_v54, %v343_v40  ;;  %v467_v6 = vrot.slane %v466_v55, 2  ;;  %v758_v7 = vrot.slane %v608_v56, %v753_v57 }
  0xee   :  { %v213_v58 = vpop.f32.mrf.mxu0  ;;  %v755_v62 = vpop.f32.mrf.mxu1  ;;  %v355_v8 = vsel %vm326_vm1, %v749_v49, 0.0  ;;  %v454_v10 = vadd.f32 %v453_v59, %v452_v45  ;;  %v459_v11 = vadd.f32 %v458_v60, %v457_v48  ;;  %v763_v12 = vrot.slane %v609_v61, %v753_v57 }
  0xef   :  { %v471_v13 = vsel %vm326_vm1, %v445_v3, 0.0  ;;  %v351_v15 = vrot.slane %v350_v63, 2  ;;  %v356_v17 = vrot.slane %v355_v8, 4  ;;  %v446_v18 = vmul.f32 %v749_v49, %v749_v49 }
  0xf0   :  { %v215_v0 = vpop.f32.mrf.mxu0  ;;  %v256_v4 = vpop.f32.mrf.mxu1  ;;  %v472_v16 = vrot.slane %v471_v13, 4  ;;  %v332_v19 = vrot.slane %v331_v1, 1  ;;  %v338_v20 = vadd.f32 %v337_v2, %v336_v51  ;;  %v369_v21 = vsel %vm326_vm1, %v751_v53, 0.0 }
  0xf1   :  { %v448_v22 = vmul.f32 %v751_v53, %v751_v53  ;;  %v346_v23 = vrot.slane %v345_v5, 1  ;;  %v772_v24 = vadd.f32 %v467_v6, %v466_v55  ;;  %v478_v26 = vsel %vm326_vm1, %v446_v18, 0.0 }
  0xf2   :  { %v216_v9 = vpop.f32.mrf.mxu0  ;;  %v257_v14 = vpop.f32.mrf.mxu1  ;;  %v473_v25 = vadd.f32 %v472_v16, %v471_v13  ;;  %v455_v27 = vrot.slane %v454_v10, 1  ;;  %v460_v28 = vrot.slane %v459_v11, 2  ;;  %v479_v29 = vrot.slane %v478_v26, 4 }
  0xf3   :  { %v492_v30 = vsel %vm326_vm1, %v448_v22, 0.0  ;;  %v307_v31 = vcombine.low %v758_v7, %v763_v12  ;;  %v352_v32 = vadd.f32 %v351_v15, %v350_v63  ;;  %v357_v33 = vadd.f32 %v356_v17, %v355_v8 }
  0xf4   :  { %v370_v34 = vrot.slane %v369_v21, 4  ;;  %v778_v35 = vadd.f32 %v332_v19, %v331_v1  ;;  %v339_v36 = vrot.slane %v338_v20, 1  ;;  %v474_v37 = vrot.slane %v473_v25, 2 }
  0xf5   :  { %v610_v38 = vpack.c.bf16 %v213_v58, %v749_v49  ;;  %v781_v39 = vadd.f32 %v346_v23, %v345_v5  ;;  %v480_v40 = vadd.f32 %v479_v29, %v478_v26  ;;  %v493_v41 = vrot.slane %v492_v30, 4 }
  0xf6   :  { %v362_v42 = vsel %vm326_vm1, %v213_v58, 0.0  ;;  %v784_v43 = vadd.f32 %v455_v27, %v454_v10  ;;  %v469_v44 = vrot.slane %v772_v24, 1  ;;  %v461_v45 = vadd.f32 %v460_v28, %v459_v11 }
  0xf7   :  { %v363_v46 = vrot.slane %v362_v42, 4  ;;  %v353_v47 = vrot.slane %v352_v32, 1  ;;  %v358_v48 = vrot.slane %v357_v33, 2  ;;  %v371_v50 = vadd.f32 %v370_v34, %v369_v21 }
  0xf8   :  { %v447_v51 = vmul.f32 %v213_v58, %v213_v58  ;;  %v475_v52 = vadd.f32 %v474_v37, %v473_v25  ;;  %v299_v54 = vrot.slane %v610_v38, %v753_v57  ;;  %v611_v55 = vpack.c.bf16 %v755_v62, %v751_v53 }
  0xf9   :  { %v364_v49 = vadd.f32 %v363_v46, %v362_v42  ;;  %v790_v56 = vadd.f32 %v339_v36, %v338_v20  ;;  %v481_v59 = vrot.slane %v480_v40, 2  ;;  %v494_v60 = vadd.f32 %v493_v41, %v492_v30 }
  0xfa   :  { %v485_v61 = vsel %vm326_vm1, %v447_v51, 0.0  ;;  %v462_v63 = vrot.slane %v461_v45, 1  ;;  %v306_v2 = vrot.slane %v611_v55, %v753_v57  ;;  %v354_v3 = vadd.f32 %v353_v47, %v352_v32 }
  0xfb   :  { %v365_v0 = vrot.slane %v364_v49, 2  ;;  %v486_v1 = vrot.slane %v485_v61, 4  ;;  %v359_v58 = vadd.f32 %v358_v48, %v357_v33  ;;  %v372_v4 = vrot.slane %v371_v50, 2 }
  0xfc   :  { %v376_v5 = vsel %vm326_vm1, %v755_v62, 0.0  ;;  %v476_v6 = vrot.slane %v475_v52, 1  ;;  %v308_v8 = vcombine.low %v299_v54, %v306_v2  ;;  %v482_v9 = vadd.f32 %v481_v59, %v480_v40 }
  0xfd   :  { %v366_v7 = vadd.f32 %v365_v0, %v364_v49  ;;  %v487_v53 = vadd.f32 %v486_v1, %v485_v61  ;;  %v495_v10 = vrot.slane %v494_v60, 2  ;;  %v377_v11 = vrot.slane %v376_v5, 4 }
  0xfe   :  { %v449_v12 = vmul.f32 %v755_v62, %v755_v62  ;;  %v315_v15 = vrot.slane %v307_v31, %v753_v57  ;;  %v322_v16 = vrot.slane %v308_v8, %v753_v57  ;;  %v360_v17 = vrot.slane %v359_v58, 1 }
  0xff   :  { %v367_v13 = vrot.slane %v366_v7, 1  ;;  %v488_v14 = vrot.slane %v487_v53, 2  ;;  %v373_v18 = vadd.f32 %v372_v4, %v371_v50  ;;  %v378_v19 = vadd.f32 %v377_v11, %v376_v5 }
 0x100   :  { %v499_v20 = vsel %vm326_vm1, %v449_v12, 0.0  ;;  %v391_v21 = vcombine.low %v778_v35, %v790_v56  ;;  %v323_v25 = vcombine.low %v315_v15, %v322_v16  ;;  %v463_v62 = vadd.f32 %v462_v63, %v461_v45 }
 0x101   :  { %v489_v22 = vadd.f32 %v488_v14, %v487_v53  ;;  %v500_v23 = vrot.slane %v499_v20, 4  ;;  %v477_v26 = vadd.f32 %v476_v6, %v475_v52  ;;  %v368_v27 = vadd.f32 %v367_v13, %v366_v7 }
 0x102   :  { %v379_v28 = vrot.slane %v378_v19, 2  ;;  %v483_v29 = vrot.slane %v482_v9, 1  ;;  %v496_v30 = vadd.f32 %v495_v10, %v494_v60  ;;  %325 = vst [vmem:[#allocation7] sm:$0xff] %v323_v25  ;;  %v392_v33 = vcombine.low %v781_v39, %v354_v3 }
 0x103   :  { %v490_v31 = vrot.slane %v489_v22, 1  ;;  %v501_v32 = vadd.f32 %v500_v23, %v499_v20  ;;  %v361_v34 = vadd.f32 %v360_v17, %v359_v58  ;;  %v374_v36 = vrot.slane %v373_v18, 1 }
 0x104   :  { %v380_v37 = vadd.f32 %v379_v28, %v378_v19 }
 0x105   :  { %671 = shalt.err (!%p668_p0)
}
 0x106   :  { %575 = dma.vmem_to_hbm [thread:$0]  %s573_s1, 128, %s828_s2, [#allocation4]   ;;  %v470_v35 = vadd.f32 %v469_v44, %v772_v24  ;;  %v491_v38 = vadd.f32 %v490_v31, %v489_v22  ;;  %v502_v39 = vrot.slane %v501_v32, 2  ;;  %v514_v40 = vcombine.low %v784_v43, %v463_v62 }
 0x107   :  { %v393_v41 = vcombine.low %v361_v34, %v368_v27  ;;  %v381_v42 = vrot.slane %v380_v37, 1  ;;  %v484_v46 = vadd.f32 %v483_v29, %v482_v9  ;;  %v497_v47 = vrot.slane %v496_v30, 1  ;;  %s715_s2 = smov [#allocation8]  }
 0x108   :  { %v515_v45 = vcombine.low %v470_v35, %v477_v26  ;;  %v503_v48 = vadd.f32 %v502_v39, %v501_v32  ;;  %v375_v50 = vadd.f32 %v374_v36, %v373_v18  ;;  %v401_v52 = vrot.slane %v391_v21, %v753_v57  ;;  %s582_s28 = sshll.u32 %s715_s2, 4  ;;  %s583_s28 = int_to_ptr.vmem [resolvable:$true] %s582_s28 }
 0x109   :  { %v382_v51 = vadd.f32 %v381_v42, %v380_v37  ;;  %v408_v54 = vrot.slane %v392_v33, %v753_v57  ;;  %v516_v49 = vcombine.low %v484_v46, %v491_v38  ;;  %v415_v24 = vrot.slane %v393_v41, %v753_v57  ;;  %s680_s29 = scalar_lea.vmem %s583_s28, 256  ;;  %p685_p2 = scmp.lt.s32.totalorder %s583_s28, %s583_s28 }
 0x10a   :  { %v504_v55 = vrot.slane %v503_v48, 1  ;;  %v498_v44 = vadd.f32 %v497_v47, %v496_v30  ;;  %v524_v43 = vrot.slane %v514_v40, %v753_v57  ;;  %v531_v60 = vrot.slane %v515_v45, %v753_v57  ;;  %p681_p1 = scmp.ne.s32.totalorder %s583_s28, %s680_s29  ;;  %p686_p3 = scmp.lt.s32.totalorder %s680_s29, %s680_s29 }
 0x10b   :  { %v394_v56 = vcombine.low %v375_v50, %v382_v51  ;;  %v423_v63 = vcombine.low %v401_v52, %v408_v54  ;;  %v538_v1 = vrot.slane %v516_v49, %v753_v57 }
 0x10c   :  { %v505_v59 = vadd.f32 %v504_v55, %v503_v48  ;;  %v546_v58 = vcombine.low %v524_v43, %v531_v60  ;;  %p687_p4 = por %p686_p3, %p685_p2 }
 0x10d   :  { %v422_v61 = vrot.slane %v394_v56, %v753_v57  ;;  %v431_v4 = vrot.slane %v423_v63, %v753_v57 }
 0x10e   :  { %v517_v0 = vcombine.low %v498_v44, %v505_v59  ;;  %v554_v53 = vrot.slane %v546_v58, %v753_v57  ;;  %p688_p5 = pnand %p687_p4, %p681_p1 }
 0x10f   :  { %v424_v2 = vcombine.low %v415_v24, %v422_v61 }
 0x110   :  { %v545_v3 = vrot.slane %v517_v0, %v753_v57 }
 0x111   :  { %v438_v5 = vrot.slane %v424_v2, %v753_v57 }
 0x112   :  { %v547_v6 = vcombine.low %v538_v1, %v545_v3 }
 0x113   :  { %v439_v7 = vcombine.low %v431_v4, %v438_v5 }
 0x114   :  { %v561_v8 = vrot.slane %v547_v6, %v753_v57 }
 0x115   :  { %441 = vst [vmem:[#allocation8] ss:$2 sm:$0xff] %v439_v7 }
 0x116   :  { %v562_v9 = vcombine.low %v554_v53, %v561_v8 }
 0x118   :  { %565 = vst [vmem:[#allocation8 + $0x1] ss:$2 sm:$0xff] %v562_v9 }
 0x119   :  { %691 = shalt.err (!%p688_p5)
}
 0x11a   :  { %585 = dma.vmem_to_hbm [thread:$0]  %s583_s28, 256, %s829_s3, [#allocation9]  }
 0x11b   :  { %704 = dma.done.wait [#allocation4], 128  }
 0x11c   :  { %705 = vsyncadd [#allocation4], 4294967168 }
 0x11d   :  { %706 = dma.done.wait [#allocation9], 256  }
 0x11e   :  { %707 = vsyncadd [#allocation9], 4294967040 }
 0x11f   :  { %592 = vsyncpa [#allocation3], 1 }
 0x120   :  { %593 = vsyncpa [#allocation6], 1 }
 0x121   :  { %594 = vsyncpa [#allocation4], 1 }
 0x122   :  { %595 = vsyncpa [#allocation9], 1 }

</bundles_post_ra>
